<compile_context>
chip_gen: v6e
topology: v6e:2x2x1
jax: 0.10.0
libtpu: 0.0.40
codegen_flags: <defaults>
</compile_context>

<pallas_src>
import math

import jax
import jax.numpy as jnp
from jax.experimental import pallas as pl
from jax.experimental.pallas import tpu as pltpu

INPUT_DIM = 3
PADDED_INPUT_DIM = 8          # zero-padded K for the first matmul (sublane-clean)
HIDDEN_DIM = 64
OUT_DIM = 2
N_RES_BLOCKS = 2

PACK = 2                      # samples packed per kernel row (lane packing)
PACKED_IN = PADDED_INPUT_DIM * PACK    # 16
PACKED_HID = HIDDEN_DIM * PACK         # 128 -> full vreg lane width
PACKED_OUT = OUT_DIM * PACK            # 4

MAX_BATCH_TILE = 2048         # packed rows per grid step

_SQRT_HALF = 0.7071067811865476


def _gelu_exact(x):
    # PyTorch nn.GELU() default is the exact (erf-based) GELU.  Activations are
    # f32 here, so erf always lowers on the f32 path.
    return 0.5 * x * (1.0 + jax.lax.erf(x * _SQRT_HALF))


def _cdiv(a, b):
    return -(-a // b)


def _round_up(n, m):
    return ((n + m - 1) // m) * m


def _choose_grid(packed_rows):
    """Pick (n_steps, tile) over packed rows.

    - enough steps to cap the per-step tile at MAX_BATCH_TILE,
    - >= 2 steps once there is a reasonable amount of work so both v7x
      TensorCores get a share (the extra ~0.35us step is noise on v5e/v6e),
    - tile rounded up only to the sublane (8), so padding waste is bounded by
      one sublane instead of up to a full mega-tile.
    """
    n_steps = max(1, _cdiv(packed_rows, MAX_BATCH_TILE))
    if packed_rows >= 512:
        n_steps = max(n_steps, 2)
    tile = _round_up(_cdiv(packed_rows, n_steps), 8)
    return n_steps, tile


def _compact_dnn_kernel(x_ref, w_in_ref, b_in_ref, w_hid_ref, b_hid_ref,
                        w_out_ref, b_out_ref, o_ref):
    def dense(a, w, b):
        # bf16 MXU inputs, f32 accumulation; bias add is an implicit VPU broadcast.
        return jnp.dot(a.astype(jnp.bfloat16), w,
                       preferred_element_type=jnp.float32) + b

    # Input projection + GELU (x arrives already bf16; astype is a no-op).
    h = _gelu_exact(dense(x_ref[...], w_in_ref[...], b_in_ref[...]))

    # SimplifiedResBlock x2: GELU(h + Linear(GELU(Linear(h))))
    for blk in range(N_RES_BLOCKS):
        t = _gelu_exact(dense(h, w_hid_ref[2 * blk], b_hid_ref[2 * blk]))
        t = dense(t, w_hid_ref[2 * blk + 1], b_hid_ref[2 * blk + 1])
        h = _gelu_exact(h + t)

    # Output head.
    o_ref[...] = dense(h, w_out_ref[...], b_out_ref[...]).astype(o_ref.dtype)


def _block_diag(w, p):
    # p block-diagonal copies of w: (k, n) -> (p*k, p*n), built in f32 then cast.
    return jax.scipy.linalg.block_diag(*([w] * p))


def compact_dnn_forward(x, params):
    """x: (batch, INPUT_DIM) float32.  params: f32 weights (in,out) / biases (1,out)."""
    batch = x.shape[0]

    packed_rows_raw = _cdiv(batch, PACK)
    n_steps, tile = _choose_grid(packed_rows_raw)
    packed_rows = n_steps * tile
    padded_batch = packed_rows * PACK

    # Wrapper-side layout prep (cheap, fused by XLA):
    #  * cast x to bf16 once and zero-pad rows (ragged batch) + features (3->8),
    #  * lane-pack PACK samples per row: (padded_batch, 8) -> (rows, 16) view,
    #  * block-diagonal packed weights so each sample only touches its own
    #    64-lane slice; hidden activations are then 128 lanes wide.
    x_p = jnp.pad(x.astype(jnp.bfloat16),
                  ((0, padded_batch - batch), (0, PADDED_INPUT_DIM - INPUT_DIM)))
    x_p = x_p.reshape(packed_rows, PACKED_IN)

    def w_pack(w):
        return _block_diag(w, PACK).astype(jnp.bfloat16)

    def b_pack(b):
        return jnp.tile(b, (1, PACK))          # biases stay f32 (accum dtype)

    w_in_p = w_pack(jnp.pad(params["w_in"],
                            ((0, PADDED_INPUT_DIM - INPUT_DIM), (0, 0))))  # (16,128)
    b_in_p = b_pack(params["b_in"])                                        # (1,128)

    hid_names = ("r0a", "r0b", "r1a", "r1b")
    w_hid = jnp.stack([w_pack(params["w_" + n]) for n in hid_names])  # (4,128,128) bf16
    b_hid = jnp.stack([b_pack(params["b_" + n]) for n in hid_names])  # (4,1,128)  f32

    w_out_p = w_pack(params["w_out"])          # (128, 4)
    b_out_p = b_pack(params["b_out"])          # (1, 4)

    def resident(a):
        # Whole small array with a constant block index -> stays resident in VMEM.
        nd = a.ndim
        return pl.BlockSpec(a.shape, lambda i, _nd=nd: (0,) * _nd)

    in_specs = [pl.BlockSpec((tile, PACKED_IN), lambda i: (i, 0))]
    in_specs += [resident(a) for a in
                 (w_in_p, b_in_p, w_hid, b_hid, w_out_p, b_out_p)]
    out_spec = pl.BlockSpec((tile, PACKED_OUT), lambda i: (i, 0))

    out = pl.pallas_call(
        _compact_dnn_kernel,
        out_shape=jax.ShapeDtypeStruct((packed_rows, PACKED_OUT), jnp.float32),
        grid_spec=pltpu.PrefetchScalarGridSpec(
            num_scalar_prefetch=0,
            grid=(n_steps,),
            in_specs=in_specs,
            out_specs=out_spec,
        ),
        compiler_params=pltpu.CompilerParams(
            dimension_semantics=("parallel",),
            vmem_limit_bytes=32 * 1024 * 1024,
        ),
    )(x_p, w_in_p, b_in_p, w_hid, b_hid, w_out_p, b_out_p)

    # Un-pack lanes: (rows, 2*PACK) -> (padded_batch, 2), drop padded rows.
    return out.reshape(padded_batch, OUT_DIM)[:batch]


def _xavier_uniform(key, fan_in, fan_out, dtype=jnp.float32):
    # Matches torch.nn.init.xavier_uniform_ on a (fan_out, fan_in) weight.
    bound = math.sqrt(6.0 / (fan_in + fan_out))
    w = jax.random.uniform(key, (fan_out, fan_in), dtype=dtype, minval=-bound, maxval=bound)
    return w.T  # kernel uses (in, out) layout


def init_params(key):
    keys = jax.random.split(key, 6)
    return {
        "w_in": _xavier_uniform(keys[0], INPUT_DIM, HIDDEN_DIM),
        "b_in": jnp.zeros((1, HIDDEN_DIM), jnp.float32),
        "w_r0a": _xavier_uniform(keys[1], HIDDEN_DIM, HIDDEN_DIM),
        "b_r0a": jnp.zeros((1, HIDDEN_DIM), jnp.float32),
        "w_r0b": _xavier_uniform(keys[2], HIDDEN_DIM, HIDDEN_DIM),
        "b_r0b": jnp.zeros((1, HIDDEN_DIM), jnp.float32),
        "w_r1a": _xavier_uniform(keys[3], HIDDEN_DIM, HIDDEN_DIM),
        "b_r1a": jnp.zeros((1, HIDDEN_DIM), jnp.float32),
        "w_r1b": _xavier_uniform(keys[4], HIDDEN_DIM, HIDDEN_DIM),
        "b_r1b": jnp.zeros((1, HIDDEN_DIM), jnp.float32),
        "w_out": _xavier_uniform(keys[5], HIDDEN_DIM, OUT_DIM),
        "b_out": jnp.zeros((1, OUT_DIM), jnp.float32),
    }


def reference_forward_bf16(x, params):
    """Pure-JAX reference mirroring the kernel's bf16-input / f32-accum matmuls."""
    def dense(a, w, b):
        return jnp.dot(a.astype(jnp.bfloat16), w.astype(jnp.bfloat16),
                       preferred_element_type=jnp.float32) + b

    h = _gelu_exact(dense(x, params["w_in"], params["b_in"]))
    for a, b in (("r0a", "r0b"), ("r1a", "r1b")):
        t = _gelu_exact(dense(h, params["w_" + a], params["b_" + a]))
        t = dense(t, params["w_" + b], params["b_" + b])
        h = _gelu_exact(h + t)
    return dense(h, params["w_out"], params["b_out"])


def reference_forward_f32(x, params):
    """Full-precision reference matching the original PyTorch module."""
    h = _gelu_exact(x @ params["w_in"] + params["b_in"])
    for a, b in (("r0a", "r0b"), ("r1a", "r1b")):
        t = _gelu_exact(h @ params["w_" + a] + params["b_" + a])
        t = t @ params["w_" + b] + params["b_" + b]
        h = _gelu_exact(h + t)
    return h @ params["w_out"] + params["b_out"]


if __name__ == "__main__":
    key = jax.random.PRNGKey(0)
    pkey, xkey = jax.random.split(key)
    params = init_params(pkey)

    # batch=16: single aligned tile; batch=5: ragged pad path; batch=1040:
    # exercises the >=2-step grid (both v7x cores) and bounded-waste tiling.
    for batch in (16, 5, 1040):
        x = jax.random.normal(jax.random.fold_in(xkey, batch),
                              (batch, INPUT_DIM), dtype=jnp.float32)

        out = jax.block_until_ready(compact_dnn_forward(x, params))
        assert out.shape == (batch, OUT_DIM)

        # Tight check against a reference that mirrors the kernel's bf16 matmuls.
        ref_bf16 = reference_forward_bf16(x, params)
        assert jnp.allclose(out, ref_bf16, atol=2e-2, rtol=2e-2), \
            "kernel mismatch vs bf16-mirrored reference"

        # Loose sanity check against the exact-f32 PyTorch-equivalent forward.
        ref_f32 = reference_forward_f32(x, params)
        max_diff = float(jnp.max(jnp.abs(out - ref_f32)))
        assert max_diff < 0.25, f"kernel drifted too far from f32 reference: {max_diff}"

    print("KERNEL_OK")
</pallas_src>

<mosaic_0001>
module attributes {stable_mosaic.version = 11 : i64} {
  func.func @_compact_dnn_kernel(%arg0: i32, %arg1: memref<8x16xbf16, #tpu.memory_space<vmem>>, %arg2: memref<16x128xbf16, #tpu.memory_space<vmem>>, %arg3: memref<1x128xf32, #tpu.memory_space<vmem>>, %arg4: memref<4x128x128xbf16, #tpu.memory_space<vmem>>, %arg5: memref<4x1x128xf32, #tpu.memory_space<vmem>>, %arg6: memref<128x4xbf16, #tpu.memory_space<vmem>>, %arg7: memref<1x4xf32, #tpu.memory_space<vmem>>, %arg8: memref<8x4xf32, #tpu.memory_space<vmem>>) attributes {dimension_semantics = [#tpu.dimension_semantics<parallel>], iteration_bounds = array<i64: 1>, scalar_prefetch = 0 : i64, scratch_operands = 0 : i64, tpu.core_type = #tpu.core_type<tc>, window_params = [{transform_indices = @transform_0, window_bounds = array<i64: 8, 16>}, {pipeline_mode = #tpu.pipeline_mode<synchronous>, transform_indices = @transform_1, window_bounds = array<i64: 16, 128>}, {pipeline_mode = #tpu.pipeline_mode<synchronous>, transform_indices = @transform_2, window_bounds = array<i64: 1, 128>}, {pipeline_mode = #tpu.pipeline_mode<synchronous>, transform_indices = @transform_3, window_bounds = array<i64: 4, 128, 128>}, {pipeline_mode = #tpu.pipeline_mode<synchronous>, transform_indices = @transform_4, window_bounds = array<i64: 4, 1, 128>}, {pipeline_mode = #tpu.pipeline_mode<synchronous>, transform_indices = @transform_5, window_bounds = array<i64: 128, 4>}, {pipeline_mode = #tpu.pipeline_mode<synchronous>, transform_indices = @transform_6, window_bounds = array<i64: 1, 4>}, {transform_indices = @transform_7, window_bounds = array<i64: 8, 4>}]} {
    %c0 = arith.constant 0 : index
    %c0_0 = arith.constant 0 : index
    %0 = vector.load %arg1[%c0, %c0_0] : memref<8x16xbf16, #tpu.memory_space<vmem>>, vector<8x16xbf16>
    %c0_1 = arith.constant 0 : index
    %c0_2 = arith.constant 0 : index
    %1 = vector.load %arg2[%c0_1, %c0_2] : memref<16x128xbf16, #tpu.memory_space<vmem>>, vector<16x128xbf16>
    %c0_3 = arith.constant 0 : index
    %c0_4 = arith.constant 0 : index
    %2 = vector.load %arg3[%c0_3, %c0_4] : memref<1x128xf32, #tpu.memory_space<vmem>>, vector<1x128xf32>
    %cst = arith.constant dense<0.000000e+00> : vector<8x128xf32>
    %3 = tpu.matmul %0, %1, %cst {dimension_numbers = #tpu.dot_dimension_numbers<[1], [0], [0], [1], [0, 0, 1, 1], [], []>} : vector<8x16xbf16>, vector<16x128xbf16>, vector<8x128xf32> -> vector<8x128xf32>
    %4 = vector.broadcast %2 : vector<1x128xf32> to vector<8x128xf32>
    %5 = arith.addf %3, %4 : vector<8x128xf32>
    %cst_5 = arith.constant 5.000000e-01 : f32
    %6 = vector.broadcast %cst_5 : f32 to vector<8x128xf32>
    %7 = arith.mulf %6, %5 : vector<8x128xf32>
    %cst_6 = arith.constant 0.707106769 : f32
    %8 = vector.broadcast %cst_6 : f32 to vector<8x128xf32>
    %9 = arith.mulf %5, %8 : vector<8x128xf32>
    %10 = math.erf %9 : vector<8x128xf32>
    %cst_7 = arith.constant 1.000000e+00 : f32
    %11 = vector.broadcast %cst_7 : f32 to vector<8x128xf32>
    %12 = arith.addf %11, %10 : vector<8x128xf32>
    %13 = arith.mulf %7, %12 : vector<8x128xf32>
    %c0_8 = arith.constant 0 : index
    %c0_9 = arith.constant 0 : index
    %c0_10 = arith.constant 0 : index
    %14 = vector.load %arg4[%c0_8, %c0_9, %c0_10] : memref<4x128x128xbf16, #tpu.memory_space<vmem>>, vector<1x128x128xbf16>
    %15 = vector.shape_cast %14 : vector<1x128x128xbf16> to vector<128x128xbf16>
    %c0_11 = arith.constant 0 : index
    %c0_12 = arith.constant 0 : index
    %c0_13 = arith.constant 0 : index
    %16 = vector.load %arg5[%c0_11, %c0_12, %c0_13] : memref<4x1x128xf32, #tpu.memory_space<vmem>>, vector<1x1x128xf32>
    %17 = vector.shape_cast %16 : vector<1x1x128xf32> to vector<1x128xf32>
    %18 = arith.truncf %13 : vector<8x128xf32> to vector<8x128xbf16>
    %cst_14 = arith.constant dense<0.000000e+00> : vector<8x128xf32>
    %19 = tpu.matmul %18, %15, %cst_14 {dimension_numbers = #tpu.dot_dimension_numbers<[1], [0], [0], [1], [0, 0, 1, 1], [], []>} : vector<8x128xbf16>, vector<128x128xbf16>, vector<8x128xf32> -> vector<8x128xf32>
    %20 = vector.broadcast %17 : vector<1x128xf32> to vector<8x128xf32>
    %21 = arith.addf %19, %20 : vector<8x128xf32>
    %cst_15 = arith.constant 5.000000e-01 : f32
    %22 = vector.broadcast %cst_15 : f32 to vector<8x128xf32>
    %23 = arith.mulf %22, %21 : vector<8x128xf32>
    %cst_16 = arith.constant 0.707106769 : f32
    %24 = vector.broadcast %cst_16 : f32 to vector<8x128xf32>
    %25 = arith.mulf %21, %24 : vector<8x128xf32>
    %26 = math.erf %25 : vector<8x128xf32>
    %cst_17 = arith.constant 1.000000e+00 : f32
    %27 = vector.broadcast %cst_17 : f32 to vector<8x128xf32>
    %28 = arith.addf %27, %26 : vector<8x128xf32>
    %29 = arith.mulf %23, %28 : vector<8x128xf32>
    %c1 = arith.constant 1 : index
    %c0_18 = arith.constant 0 : index
    %c0_19 = arith.constant 0 : index
    %30 = vector.load %arg4[%c1, %c0_18, %c0_19] : memref<4x128x128xbf16, #tpu.memory_space<vmem>>, vector<1x128x128xbf16>
    %31 = vector.shape_cast %30 : vector<1x128x128xbf16> to vector<128x128xbf16>
    %c1_20 = arith.constant 1 : index
    %c0_21 = arith.constant 0 : index
    %c0_22 = arith.constant 0 : index
    %32 = vector.load %arg5[%c1_20, %c0_21, %c0_22] : memref<4x1x128xf32, #tpu.memory_space<vmem>>, vector<1x1x128xf32>
    %33 = vector.shape_cast %32 : vector<1x1x128xf32> to vector<1x128xf32>
    %34 = arith.truncf %29 : vector<8x128xf32> to vector<8x128xbf16>
    %cst_23 = arith.constant dense<0.000000e+00> : vector<8x128xf32>
    %35 = tpu.matmul %34, %31, %cst_23 {dimension_numbers = #tpu.dot_dimension_numbers<[1], [0], [0], [1], [0, 0, 1, 1], [], []>} : vector<8x128xbf16>, vector<128x128xbf16>, vector<8x128xf32> -> vector<8x128xf32>
    %36 = vector.broadcast %33 : vector<1x128xf32> to vector<8x128xf32>
    %37 = arith.addf %35, %36 : vector<8x128xf32>
    %38 = arith.addf %13, %37 : vector<8x128xf32>
    %cst_24 = arith.constant 5.000000e-01 : f32
    %39 = vector.broadcast %cst_24 : f32 to vector<8x128xf32>
    %40 = arith.mulf %39, %38 : vector<8x128xf32>
    %cst_25 = arith.constant 0.707106769 : f32
    %41 = vector.broadcast %cst_25 : f32 to vector<8x128xf32>
    %42 = arith.mulf %38, %41 : vector<8x128xf32>
    %43 = math.erf %42 : vector<8x128xf32>
    %cst_26 = arith.constant 1.000000e+00 : f32
    %44 = vector.broadcast %cst_26 : f32 to vector<8x128xf32>
    %45 = arith.addf %44, %43 : vector<8x128xf32>
    %46 = arith.mulf %40, %45 : vector<8x128xf32>
    %c2 = arith.constant 2 : index
    %c0_27 = arith.constant 0 : index
    %c0_28 = arith.constant 0 : index
    %47 = vector.load %arg4[%c2, %c0_27, %c0_28] : memref<4x128x128xbf16, #tpu.memory_space<vmem>>, vector<1x128x128xbf16>
    %48 = vector.shape_cast %47 : vector<1x128x128xbf16> to vector<128x128xbf16>
    %c2_29 = arith.constant 2 : index
    %c0_30 = arith.constant 0 : index
    %c0_31 = arith.constant 0 : index
    %49 = vector.load %arg5[%c2_29, %c0_30, %c0_31] : memref<4x1x128xf32, #tpu.memory_space<vmem>>, vector<1x1x128xf32>
    %50 = vector.shape_cast %49 : vector<1x1x128xf32> to vector<1x128xf32>
    %51 = arith.truncf %46 : vector<8x128xf32> to vector<8x128xbf16>
    %cst_32 = arith.constant dense<0.000000e+00> : vector<8x128xf32>
    %52 = tpu.matmul %51, %48, %cst_32 {dimension_numbers = #tpu.dot_dimension_numbers<[1], [0], [0], [1], [0, 0, 1, 1], [], []>} : vector<8x128xbf16>, vector<128x128xbf16>, vector<8x128xf32> -> vector<8x128xf32>
    %53 = vector.broadcast %50 : vector<1x128xf32> to vector<8x128xf32>
    %54 = arith.addf %52, %53 : vector<8x128xf32>
    %cst_33 = arith.constant 5.000000e-01 : f32
    %55 = vector.broadcast %cst_33 : f32 to vector<8x128xf32>
    %56 = arith.mulf %55, %54 : vector<8x128xf32>
    %cst_34 = arith.constant 0.707106769 : f32
    %57 = vector.broadcast %cst_34 : f32 to vector<8x128xf32>
    %58 = arith.mulf %54, %57 : vector<8x128xf32>
    %59 = math.erf %58 : vector<8x128xf32>
    %cst_35 = arith.constant 1.000000e+00 : f32
    %60 = vector.broadcast %cst_35 : f32 to vector<8x128xf32>
    %61 = arith.addf %60, %59 : vector<8x128xf32>
    %62 = arith.mulf %56, %61 : vector<8x128xf32>
    %c3 = arith.constant 3 : index
    %c0_36 = arith.constant 0 : index
    %c0_37 = arith.constant 0 : index
    %63 = vector.load %arg4[%c3, %c0_36, %c0_37] : memref<4x128x128xbf16, #tpu.memory_space<vmem>>, vector<1x128x128xbf16>
    %64 = vector.shape_cast %63 : vector<1x128x128xbf16> to vector<128x128xbf16>
    %c3_38 = arith.constant 3 : index
    %c0_39 = arith.constant 0 : index
    %c0_40 = arith.constant 0 : index
    %65 = vector.load %arg5[%c3_38, %c0_39, %c0_40] : memref<4x1x128xf32, #tpu.memory_space<vmem>>, vector<1x1x128xf32>
    %66 = vector.shape_cast %65 : vector<1x1x128xf32> to vector<1x128xf32>
    %67 = arith.truncf %62 : vector<8x128xf32> to vector<8x128xbf16>
    %cst_41 = arith.constant dense<0.000000e+00> : vector<8x128xf32>
    %68 = tpu.matmul %67, %64, %cst_41 {dimension_numbers = #tpu.dot_dimension_numbers<[1], [0], [0], [1], [0, 0, 1, 1], [], []>} : vector<8x128xbf16>, vector<128x128xbf16>, vector<8x128xf32> -> vector<8x128xf32>
    %69 = vector.broadcast %66 : vector<1x128xf32> to vector<8x128xf32>
    %70 = arith.addf %68, %69 : vector<8x128xf32>
    %71 = arith.addf %46, %70 : vector<8x128xf32>
    %cst_42 = arith.constant 5.000000e-01 : f32
    %72 = vector.broadcast %cst_42 : f32 to vector<8x128xf32>
    %73 = arith.mulf %72, %71 : vector<8x128xf32>
    %cst_43 = arith.constant 0.707106769 : f32
    %74 = vector.broadcast %cst_43 : f32 to vector<8x128xf32>
    %75 = arith.mulf %71, %74 : vector<8x128xf32>
    %76 = math.erf %75 : vector<8x128xf32>
    %cst_44 = arith.constant 1.000000e+00 : f32
    %77 = vector.broadcast %cst_44 : f32 to vector<8x128xf32>
    %78 = arith.addf %77, %76 : vector<8x128xf32>
    %79 = arith.mulf %73, %78 : vector<8x128xf32>
    %c0_45 = arith.constant 0 : index
    %c0_46 = arith.constant 0 : index
    %80 = vector.load %arg6[%c0_45, %c0_46] : memref<128x4xbf16, #tpu.memory_space<vmem>>, vector<128x4xbf16>
    %c0_47 = arith.constant 0 : index
    %c0_48 = arith.constant 0 : index
    %81 = vector.load %arg7[%c0_47, %c0_48] : memref<1x4xf32, #tpu.memory_space<vmem>>, vector<1x4xf32>
    %82 = arith.truncf %79 : vector<8x128xf32> to vector<8x128xbf16>
    %cst_49 = arith.constant dense<0.000000e+00> : vector<8x4xf32>
    %83 = tpu.matmul %82, %80, %cst_49 {dimension_numbers = #tpu.dot_dimension_numbers<[1], [0], [0], [1], [0, 0, 1, 1], [], []>} : vector<8x128xbf16>, vector<128x4xbf16>, vector<8x4xf32> -> vector<8x4xf32>
    %84 = vector.broadcast %81 : vector<1x4xf32> to vector<8x4xf32>
    %85 = arith.addf %83, %84 : vector<8x4xf32>
    %c0_50 = arith.constant 0 : index
    %c0_51 = arith.constant 0 : index
    %86 = vector.load %arg8[%c0_50, %c0_51] : memref<8x4xf32, #tpu.memory_space<vmem>>, vector<8x4xf32>
    tpu.vector_store %arg8[%c0_50, %c0_51], %85 {strides = array<i32>} : memref<8x4xf32, #tpu.memory_space<vmem>>, vector<8x4xf32>,
    return
  }
  func.func @transform_0(%arg0: i32) -> (i32, i32) {
    %c0_i32 = arith.constant 0 : i32
    %c0_i32_0 = arith.constant 0 : i32
    return %arg0, %c0_i32 : i32, i32
  }
  func.func @transform_1(%arg0: i32) -> (i32, i32) {
    %c0_i32 = arith.constant 0 : i32
    %c0_i32_0 = arith.constant 0 : i32
    %c0_i32_1 = arith.constant 0 : i32
    return %c0_i32, %c0_i32_0 : i32, i32
  }
  func.func @transform_2(%arg0: i32) -> (i32, i32) {
    %c0_i32 = arith.constant 0 : i32
    %c0_i32_0 = arith.constant 0 : i32
    %c0_i32_1 = arith.constant 0 : i32
    return %c0_i32, %c0_i32_0 : i32, i32
  }
  func.func @transform_3(%arg0: i32) -> (i32, i32, i32) {
    %c0_i32 = arith.constant 0 : i32
    %c0_i32_0 = arith.constant 0 : i32
    %c0_i32_1 = arith.constant 0 : i32
    %c0_i32_2 = arith.constant 0 : i32
    return %c0_i32, %c0_i32_0, %c0_i32_1 : i32, i32, i32
  }
  func.func @transform_4(%arg0: i32) -> (i32, i32, i32) {
    %c0_i32 = arith.constant 0 : i32
    %c0_i32_0 = arith.constant 0 : i32
    %c0_i32_1 = arith.constant 0 : i32
    %c0_i32_2 = arith.constant 0 : i32
    return %c0_i32, %c0_i32_0, %c0_i32_1 : i32, i32, i32
  }
  func.func @transform_5(%arg0: i32) -> (i32, i32) {
    %c0_i32 = arith.constant 0 : i32
    %c0_i32_0 = arith.constant 0 : i32
    %c0_i32_1 = arith.constant 0 : i32
    return %c0_i32, %c0_i32_0 : i32, i32
  }
  func.func @transform_6(%arg0: i32) -> (i32, i32) {
    %c0_i32 = arith.constant 0 : i32
    %c0_i32_0 = arith.constant 0 : i32
    %c0_i32_1 = arith.constant 0 : i32
    return %c0_i32, %c0_i32_0 : i32, i32
  }
  func.func @transform_7(%arg0: i32) -> (i32, i32) {
    %c0_i32 = arith.constant 0 : i32
    %c0_i32_0 = arith.constant 0 : i32
    return %arg0, %c0_i32 : i32, i32
  }
}

</mosaic_0001>

<bundles_post_ra>
// kernel: tpu_custom_call.1
= control target key start
LH: loop header
LB: loop body
LE: loop exit
PB: predicated region body
PF: predicated region fallthrough
CT: control target
= control target key end

     0   :  { %12 = vsyncpa [#allocation3], 0  ;;  %s983_s24 = smov [#allocation2]   ;;  %s1140_s0 = inlined_call_operand.vmem [shape: bf16[8,16], index: 0, kind: input, shape index: {}]   ;;  %s1141_s1 = inlined_call_operand.vmem [shape: bf16[16,128], index: 1, kind: input, shape index: {}]   ;;  %s1142_s2 = inlined_call_operand.vmem [shape: f32[1,128], index: 2, kind: input, shape index: {}]   ;;  %s1143_s3 = inlined_call_operand.hbm [shape: bf16[4,128,128], index: 3, kind: input, shape index: {}]   ;;  %s1144_s4 = inlined_call_operand.vmem [shape: f32[4,1,128], index: 4, kind: input, shape index: {}]   ;;  %s1145_s5 = inlined_call_operand.vmem [shape: bf16[128,4], index: 5, kind: input, shape index: {}]   ;;  %s1146_s6 = inlined_call_operand.vmem [shape: f32[1,4], index: 6, kind: input, shape index: {}]   ;;  %s1147_s7 = inlined_call_operand.vmem [shape: f32[8,4], index: 7, kind: output, shape index: {}]  }
   0x1   :  { %s24_s25 = sshll.u32 %s983_s24, 4  ;;  %s25_s25 = int_to_ptr.vmem [resolvable:$true] %s24_s25 }
   0x2   :  { %s969_s26 = scalar_lea.vmem %s25_s25, 4096  ;;  %p974_p1 = scmp.lt.s32.totalorder %s25_s25, %s25_s25 }
   0x3   :  { %p970_p0 = scmp.ne.s32.totalorder %s25_s25, %s969_s26  ;;  %p975_p2 = scmp.lt.s32.totalorder %s969_s26, %s969_s26 }
   0x5   :  { %p976_p3 = por %p975_p2, %p974_p1 }
   0x7   :  { %p977_p4 = pnand %p976_p3, %p970_p0 }
   0x9   :  { %980 = shalt.err (!%p977_p4)
}
   0xa   :  { %s984_s27 = smov 64   ;;  %s985_s28 = smov 4  }
   0xb   :  { %30 = dma.hbm_to_vmem [thread:$0]  %s1143_s3, 4096, %s25_s25, [#allocation3], %s984_s27, %s984_s27, %s985_s28  }
   0xc   :  { %981 = dma.done.wait [#allocation3], 4096  }
   0xd   :  { %982 = vsyncadd [#allocation3], 4294963200  ;;  %v986_v0 = vmov 0.0   ;;  %vm987_vm0 = vmmov 0   ;;  %v910_v1 = vld [vmem:[%s1141_s1] sm:$0xff]   ;;  %vm57_vm1 = vcmask 130048  }
   0xe   :  { %799 = vmatprep.subr.bf16.mxu0 %v986_v0  ;;  %801 = vmatprep.mubr.msk.bf16.mxu0 %vm987_vm0, %v986_v0  ;;  %v41_v2 = vld [vmem:[%s1140_s0] sm:$0xf]  ;;  %v911_v3 = vld [vmem:[#allocation2 + $0x38] sm:$0xff]   ;;  %v912_v4 = vld [vmem:[#allocation2 + $0x30] sm:$0xff]   ;;  %vm694_vm2 = vcmask 31744  }
   0xf   :  { %805 = vmatprep.subr.bf16.mxu1 %v986_v0  ;;  %821 = vmatprep.mubr.msk.bf16.mxu1 %vm987_vm0, %v986_v0  ;;  %v913_v5 = vld [vmem:[#allocation2 + $0x28] sm:$0xff]   ;;  %v914_v6 = vld [vmem:[#allocation2 + $0x20] sm:$0xff]   ;;  %v915_v7 = vld [vmem:[#allocation2 + $0x18] sm:$0xff]  }
  0x10   :  { %800 = vmatpush3.bf16.msra.mxu0 %v910_v1  ;;  %806 = vmatpush3.bf16.msra.mxu1 %v911_v3  ;;  %v916_v8 = vld [vmem:[#allocation2 + $0x10] sm:$0xff]   ;;  %v917_v9 = vld [vmem:[#allocation2 + $0x8] sm:$0xff]   ;;  %v918_v10 = vld [vmem:[#allocation2] sm:$0xff]  }
  0x11   :  { %825 = vmatprep.subr.bf16.mxu0 %v986_v0  ;;  %807 = vmatprep.subr.bf16.mxu1 %v986_v0  ;;  %v919_v11 = vld [vmem:[#allocation2 + $0x78] sm:$0xff]   ;;  %v920_v12 = vld [vmem:[#allocation2 + $0x70] sm:$0xff]   ;;  %v701_v13 = vld [vmem:[%s1142_s2] ss:$0 sm:$0xff] }
  0x12   :  { %v921_v25 = vld [vmem:[#allocation2 + $0x68] sm:$0xff]   ;;  %v922_v26 = vld [vmem:[#allocation2 + $0x60] sm:$0xff]   ;;  %v923_v27 = vld [vmem:[#allocation2 + $0x58] sm:$0xff]  }
  0x13   :  { %802 = vmatmul.mubr.msk.bf16.vlgmr.msra.gmra.mxu0 %vm57_vm1, %v41_v2  ;;  %v924_v28 = vld [vmem:[#allocation2 + $0x50] sm:$0xff]   ;;  %v925_v29 = vld [vmem:[#allocation2 + $0x48] sm:$0xff]   ;;  %v926_v30 = vld [vmem:[#allocation2 + $0x40] sm:$0xff]  }
  0x14   :  { %841 = vmatprep.mubr.msk.bf16.mxu0 %vm987_vm0, %v986_v0  ;;  %808 = vmatpush3.bf16.msra.mxu1 %v912_v4  ;;  %v927_v31 = vld [vmem:[#allocation2 + $0xb8] sm:$0xff]   ;;  %v704_v32 = vld [vmem:[%s1144_s4] ss:$0 sm:$0xff]  ;;  %v928_v44 = vld [vmem:[#allocation2 + $0xb0] sm:$0xff]  }
  0x15   :  { %809 = vmatprep.subr.bf16.mxu1 %v986_v0  ;;  %826 = vmatpush3.bf16.msra.mxu0 %v919_v11  ;;  %v929_v45 = vld [vmem:[#allocation2 + $0xa8] sm:$0xff]   ;;  %v930_v46 = vld [vmem:[#allocation2 + $0xa0] sm:$0xff]   ;;  %v931_v47 = vld [vmem:[#allocation2 + $0x98] sm:$0xff]  }
  0x16   :  { %827 = vmatprep.subr.bf16.mxu0 %v986_v0  ;;  %v932_v48 = vld [vmem:[#allocation2 + $0x90] sm:$0xff]   ;;  %v933_v49 = vld [vmem:[#allocation2 + $0x88] sm:$0xff]   ;;  %v934_v50 = vld [vmem:[#allocation2 + $0x80] sm:$0xff]  }
  0x17   :  { %v935_v51 = vld [vmem:[#allocation2 + $0xf8] sm:$0xff]   ;;  %v936_v52 = vld [vmem:[#allocation2 + $0xf0] sm:$0xff]   ;;  %v714_v53 = vld [vmem:[%s1144_s4 + $0x1] ss:$0 sm:$0xff] }
  0x18   :  { %810 = vmatpush3.bf16.msra.mxu1 %v913_v5  ;;  %v937_v3 = vld [vmem:[#allocation2 + $0xe8] sm:$0xff]   ;;  %v938_v4 = vld [vmem:[#allocation2 + $0xe0] sm:$0xff]   ;;  %v939_v5 = vld [vmem:[#allocation2 + $0xd8] sm:$0xff]  }
  0x19   :  { %811 = vmatprep.subr.bf16.mxu1 %v986_v0  ;;  %828 = vmatpush3.bf16.msra.mxu0 %v920_v12 }
  0x1a   :  { %829 = vmatprep.subr.bf16.mxu0 %v986_v0 }
  0x1c   :  { %812 = vmatpush3.bf16.msra.mxu1 %v914_v6  ;;  %v940_v6 = vld [vmem:[#allocation2 + $0xd0] sm:$0xff]  }
  0x1d   :  { %813 = vmatprep.subr.bf16.mxu1 %v986_v0  ;;  %830 = vmatpush3.bf16.msra.mxu0 %v921_v25  ;;  %v947_v25 = vld [vmem:[%s1145_s5 + $0x18] sm:$0xff]  }
  0x1e   :  { %831 = vmatprep.subr.bf16.mxu0 %v986_v0 }
  0x20   :  { %814 = vmatpush3.bf16.msra.mxu1 %v915_v7  ;;  %v941_v7 = vld [vmem:[#allocation2 + $0xc8] sm:$0xff]  }
  0x21   :  { %815 = vmatprep.subr.bf16.mxu1 %v986_v0  ;;  %832 = vmatpush3.bf16.msra.mxu0 %v922_v26  ;;  %v948_v26 = vld [vmem:[%s1145_s5 + $0x10] sm:$0xff]  }
  0x22   :  { %833 = vmatprep.subr.bf16.mxu0 %v986_v0 }
  0x24   :  { %816 = vmatpush3.bf16.msra.mxu1 %v916_v8  ;;  %v942_v8 = vld [vmem:[#allocation2 + $0xc0] sm:$0xff]  }
  0x25   :  { %817 = vmatprep.subr.bf16.mxu1 %v986_v0  ;;  %834 = vmatpush3.bf16.msra.mxu0 %v923_v27  ;;  %v949_v27 = vld [vmem:[%s1145_s5 + $0x8] sm:$0xff]  }
  0x26   :  { %835 = vmatprep.subr.bf16.mxu0 %v986_v0 }
  0x28   :  { %818 = vmatpush3.bf16.msra.mxu1 %v917_v9  ;;  %v943_v9 = vld [vmem:[%s1145_s5 + $0x38] sm:$0xff]  }
  0x29   :  { %819 = vmatprep.subr.bf16.mxu1 %v986_v0  ;;  %836 = vmatpush3.bf16.msra.mxu0 %v924_v28  ;;  %v950_v28 = vld [vmem:[%s1145_s5] sm:$0xff]  }
  0x2a   :  { %837 = vmatprep.subr.bf16.mxu0 %v986_v0 }
  0x2c   :  { %820 = vmatpush3.bf16.msra.mxu1 %v918_v10  ;;  %v724_v10 = vld [vmem:[%s1144_s4 + $0x2] ss:$0 sm:$0xff] }
  0x2d   :  { %845 = vmatprep.subr.bf16.mxu1 %v986_v0  ;;  %838 = vmatpush3.bf16.msra.mxu0 %v925_v29  ;;  %v734_v29 = vld [vmem:[%s1144_s4 + $0x3] ss:$0 sm:$0xff] }
  0x2e   :  { %839 = vmatprep.subr.bf16.mxu0 %v986_v0 }
  0x31   :  { %840 = vmatpush3.bf16.msra.mxu0 %v926_v30 }
  0x32   :  { %865 = vmatprep.subr.bf16.mxu0 %v986_v0 }
  0xd3   :  { %v95_v14 = vpop.f32.mrf.mxu0 }
  0xd4   :  { %v96_v15 = vadd.f32 %v701_v13, %v95_v14 }
  0xd5   :  { %v803_v16 = vpop.f32.mrf.mxu0 }
  0xd6   :  { %v102_v17 = vmul.f32 0.70710677, %v96_v15  ;;  %v101_v21 = vmul.f32 0.5, %v96_v15 }
  0xd7   :  { %v98_v18 = vpop.f32.mrf.mxu0 }
  0xd8   :  { %951 = verf.f32 %v102_v17 }
  0xd9   :  { %v804_v19 = vpop.f32.mrf.mxu0 }
  0xe5   :  { %v952_v20 = vpop.eup %951 }
  0xe6   :  { %v104_v22 = vadd.f32 1.0, %v952_v20 }
  0xe8   :  { %v1059_v23 = vmul.f32 %v104_v22, %v101_v21  ;;  %v944_v22 = vld [vmem:[%s1145_s5 + $0x30] sm:$0xff]  }
  0xea   :  { %v123_v24 = vpack.c.bf16 %v1059_v23, %v1059_v23 }
  0xec   :  { %822 = vmatmul.mubr.bf16.vlgmr.msra.gmra.mxu1 %v123_v24  ;;  %v946_v24 = vld [vmem:[%s1145_s5 + $0x20] sm:$0xff]  }
  0xed   :  { %861 = vmatprep.mubr.msk.bf16.mxu1 %vm987_vm0, %v986_v0  ;;  %846 = vmatpush3.bf16.msra.mxu1 %v927_v31 }
  0xee   :  { %847 = vmatprep.subr.bf16.mxu1 %v986_v0 }
  0xf1   :  { %848 = vmatpush3.bf16.msra.mxu1 %v928_v44 }
  0xf2   :  { %849 = vmatprep.subr.bf16.mxu1 %v986_v0 }
  0xf5   :  { %850 = vmatpush3.bf16.msra.mxu1 %v929_v45 }
  0xf6   :  { %851 = vmatprep.subr.bf16.mxu1 %v986_v0 }
  0xf9   :  { %852 = vmatpush3.bf16.msra.mxu1 %v930_v46 }
  0xfa   :  { %853 = vmatprep.subr.bf16.mxu1 %v986_v0 }
  0xfd   :  { %854 = vmatpush3.bf16.msra.mxu1 %v931_v47 }
  0xfe   :  { %855 = vmatprep.subr.bf16.mxu1 %v986_v0 }
 0x101   :  { %856 = vmatpush3.bf16.msra.mxu1 %v932_v48 }
 0x102   :  { %857 = vmatprep.subr.bf16.mxu1 %v986_v0 }
 0x105   :  { %858 = vmatpush3.bf16.msra.mxu1 %v933_v49 }
 0x106   :  { %859 = vmatprep.subr.bf16.mxu1 %v986_v0 }
 0x109   :  { %860 = vmatpush3.bf16.msra.mxu1 %v934_v50 }
 0x10a   :  { %885 = vmatprep.subr.bf16.mxu1 %v986_v0 }
 0x1ac   :  { %v212_v33 = vpop.f32.mrf.mxu1 }
 0x1ad   :  { %v213_v34 = vadd.f32 %v704_v32, %v212_v33 }
 0x1ae   :  { %v823_v35 = vpop.f32.mrf.mxu1 }
 0x1af   :  { %v219_v36 = vmul.f32 0.70710677, %v213_v34  ;;  %v218_v40 = vmul.f32 0.5, %v213_v34 }
 0x1b0   :  { %v215_v37 = vpop.f32.mrf.mxu1 }
 0x1b1   :  { %953 = verf.f32 %v219_v36 }
 0x1b2   :  { %v824_v38 = vpop.f32.mrf.mxu1 }
 0x1be   :  { %v954_v39 = vpop.eup %953 }
 0x1bf   :  { %v221_v41 = vadd.f32 1.0, %v954_v39 }
 0x1c1   :  { %v222_v42 = vmul.f32 %v221_v41, %v218_v40  ;;  %v743_v41 = vld [vmem:[%s1146_s6] ss:$0 sm:$0xff] }
 0x1c3   :  { %v242_v43 = vpack.c.bf16 %v222_v42, %v222_v42 }
 0x1c5   :  { %842 = vmatmul.mubr.bf16.vlgmr.msra.gmra.mxu0 %v242_v43 }
 0x1c6   :  { %881 = vmatprep.mubr.msk.bf16.mxu0 %vm987_vm0, %v986_v0  ;;  %866 = vmatpush3.bf16.msra.mxu0 %v935_v51 }
 0x1c7   :  { %867 = vmatprep.subr.bf16.mxu0 %v986_v0 }
 0x1ca   :  { %868 = vmatpush3.bf16.msra.mxu0 %v936_v52 }
 0x1cb   :  { %869 = vmatprep.subr.bf16.mxu0 %v986_v0 }
 0x1ce   :  { %870 = vmatpush3.bf16.msra.mxu0 %v937_v3 }
 0x1cf   :  { %871 = vmatprep.subr.bf16.mxu0 %v986_v0 }
 0x1d2   :  { %872 = vmatpush3.bf16.msra.mxu0 %v938_v4 }
 0x1d3   :  { %873 = vmatprep.subr.bf16.mxu0 %v986_v0 }
 0x1d6   :  { %874 = vmatpush3.bf16.msra.mxu0 %v939_v5 }
 0x1d7   :  { %875 = vmatprep.subr.bf16.mxu0 %v986_v0 }
 0x1da   :  { %876 = vmatpush3.bf16.msra.mxu0 %v940_v6 }
 0x1db   :  { %877 = vmatprep.subr.bf16.mxu0 %v986_v0 }
 0x1de   :  { %878 = vmatpush3.bf16.msra.mxu0 %v941_v7 }
 0x1df   :  { %879 = vmatprep.subr.bf16.mxu0 %v986_v0 }
 0x1e2   :  { %880 = vmatpush3.bf16.msra.mxu0 %v942_v8 }
 0x285   :  { %v331_v54 = vpop.f32.mrf.mxu0 }
 0x286   :  { %v332_v55 = vadd.f32 %v714_v53, %v331_v54 }
 0x287   :  { %v843_v56 = vpop.f32.mrf.mxu0 }
 0x288   :  { %v337_v57 = vadd.f32 %v332_v55, %v1059_v23  ;;  %v945_v23 = vld [vmem:[%s1145_s5 + $0x28] sm:$0xff]  }
 0x289   :  { %v334_v58 = vpop.f32.mrf.mxu0 }
 0x28a   :  { %v339_v59 = vmul.f32 0.70710677, %v337_v57  ;;  %v338_v62 = vmul.f32 0.5, %v337_v57 }
 0x28b   :  { %v844_v60 = vpop.f32.mrf.mxu0 }
 0x28c   :  { %955 = verf.f32 %v339_v59 }
 0x299   :  { %v956_v61 = vpop.eup %955 }
 0x29a   :  { %v341_v63 = vadd.f32 1.0, %v956_v61 }
 0x29c   :  { %v342_v1 = vmul.f32 %v341_v63, %v338_v62 }
 0x29e   :  { %v362_v2 = vpack.c.bf16 %v342_v1, %v342_v1 }
 0x2a0   :  { %862 = vmatmul.mubr.bf16.vlgmr.msra.gmra.mxu1 %v362_v2 }
 0x2a1   :  { %901 = vmatprep.mubr.msk.bf16.mxu1 %vm987_vm0, %v986_v0  ;;  %886 = vmatpush3.bf16.msra.mxu1 %v943_v9 }
 0x2a2   :  { %887 = vmatprep.subr.bf16.mxu1 %v986_v0 }
 0x2a5   :  { %888 = vmatpush3.bf16.msra.mxu1 %v944_v22 }
 0x2a6   :  { %889 = vmatprep.subr.bf16.mxu1 %v986_v0 }
 0x2a9   :  { %890 = vmatpush3.bf16.msra.mxu1 %v945_v23 }
 0x2aa   :  { %891 = vmatprep.subr.bf16.mxu1 %v986_v0 }
 0x2ad   :  { %892 = vmatpush3.bf16.msra.mxu1 %v946_v24 }
 0x2ae   :  { %893 = vmatprep.subr.bf16.mxu1 %v986_v0 }
 0x2b1   :  { %894 = vmatpush3.bf16.msra.mxu1 %v947_v25 }
 0x2b2   :  { %895 = vmatprep.subr.bf16.mxu1 %v986_v0 }
 0x2b5   :  { %896 = vmatpush3.bf16.msra.mxu1 %v948_v26 }
 0x2b6   :  { %897 = vmatprep.subr.bf16.mxu1 %v986_v0 }
 0x2b9   :  { %898 = vmatpush3.bf16.msra.mxu1 %v949_v27 }
 0x2ba   :  { %899 = vmatprep.subr.bf16.mxu1 %v986_v0 }
 0x2bd   :  { %900 = vmatpush3.bf16.msra.mxu1 %v950_v28 }
 0x360   :  { %v451_v11 = vpop.f32.mrf.mxu1 }
 0x361   :  { %v452_v12 = vadd.f32 %v724_v10, %v451_v11 }
 0x362   :  { %v863_v13 = vpop.f32.mrf.mxu1 }
 0x363   :  { %v458_v14 = vmul.f32 0.70710677, %v452_v12  ;;  %v457_v18 = vmul.f32 0.5, %v452_v12 }
 0x364   :  { %v454_v15 = vpop.f32.mrf.mxu1 }
 0x365   :  { %957 = verf.f32 %v458_v14 }
 0x366   :  { %v864_v16 = vpop.f32.mrf.mxu1 }
 0x372   :  { %v958_v17 = vpop.eup %957 }
 0x373   :  { %v460_v19 = vadd.f32 1.0, %v958_v17 }
 0x375   :  { %v461_v20 = vmul.f32 %v460_v19, %v457_v18 }
 0x377   :  { %v481_v21 = vpack.c.bf16 %v461_v20, %v461_v20 }
 0x379   :  { %882 = vmatmul.mubr.bf16.vlgmr.msra.gmra.mxu0 %v481_v21 }
 0x439   :  { %v570_v30 = vpop.f32.mrf.mxu0 }
 0x43a   :  { %v571_v31 = vadd.f32 %v734_v29, %v570_v30 }
 0x43b   :  { %v883_v32 = vpop.f32.mrf.mxu0 }
 0x43c   :  { %v576_v33 = vadd.f32 %v571_v31, %v342_v1 }
 0x43d   :  { %v573_v34 = vpop.f32.mrf.mxu0 }
 0x43e   :  { %v578_v35 = vmul.f32 0.70710677, %v576_v33  ;;  %v577_v38 = vmul.f32 0.5, %v576_v33 }
 0x43f   :  { %v884_v36 = vpop.f32.mrf.mxu0 }
 0x440   :  { %959 = verf.f32 %v578_v35 }
 0x44d   :  { %v960_v37 = vpop.eup %959 }
 0x44e   :  { %v580_v0 = vadd.f32 1.0, %v960_v37 }
 0x450   :  { %v581_v39 = vmul.f32 %v580_v0, %v577_v38 }
 0x452   :  { %v599_v40 = vpack.c.bf16 %v581_v39, %v581_v39 }
 0x454   :  { %902 = vmatmul.mubr.bf16.vlgmr.msra.gmra.mxu1 %v599_v40 }
 0x514   :  { %v688_v42 = vpop.f32.mrf.mxu1 }
 0x515   :  { %v689_v43 = vadd.f32 %v743_v41, %v688_v42 }
 0x516   :  { %v903_v44 = vpop.f32.mrf.mxu1 }
 0x517   :  { %695 = vst.msk [vmem:[%s1147_s7] sm:$0xff] %vm694_vm2, %v689_v43 }
 0x518   :  { %v691_v45 = vpop.f32.mrf.mxu1 }
 0x51a   :  { %v904_v46 = vpop.f32.mrf.mxu1 }
 0x51b   :  { %700 = vsyncpa [#allocation3], 1 }

</bundles_post_ra>
